<compile_context>
chip_gen: v7x
topology: tpu7x:2x2x1
jax: 0.10.0
libtpu: 0.0.40
codegen_flags: <defaults>
</compile_context>

<pallas_src>
import jax
import jax.numpy as jnp
from jax.experimental import pallas as pl
from jax.experimental.pallas import tpu as pltpu


_LANES = 128  # lane-pad the parameter slab (one dense tile column)


def _make_vae3_kernel(d0, d1, d2, batch):
    """Kernel factory; d0/d1/d2 = (input, hidden, latent) dims."""
    # Row offsets of each parameter block inside the packed slab.
    r_we = 0
    r_wmug = r_we + d0
    r_wd1 = r_wmug + d1
    r_wd2 = r_wd1 + d2
    r_b = r_wd2 + d1          # 4 bias rows follow the weights

    def kernel(x_ref, eps_ref, p_ref, scalars_ref, xout_ref):
        x = x_ref[...]                                    # (B, d0)
        eps = eps_ref[...]                                # (B, d2)

        # Static slices of the packed slab (ref views -> no extra DMA).
        we = p_ref[r_we:r_we + d0, 0:d1]
        wmug = p_ref[r_wmug:r_wmug + d1, 0:2 * d2]
        wd1 = p_ref[r_wd1:r_wd1 + d2, 0:d1]
        wd2 = p_ref[r_wd2:r_wd2 + d1, 0:d0]
        be = p_ref[r_b + 0:r_b + 1, 0:d1]
        bmug = p_ref[r_b + 1:r_b + 2, 0:2 * d2]
        bd1 = p_ref[r_b + 2:r_b + 3, 0:d1]
        bd2 = p_ref[r_b + 3:r_b + 4, 0:d0]

        # ---- encoder: Linear(shapes[0], shapes[1]) + ReLU ----
        h = jnp.dot(x, we, preferred_element_type=jnp.float32) + be
        h = jnp.maximum(h, 0.0)

        # ---- fused mu/gamma heads: one (d1, 2*d2) matmul ----
        mg = jnp.dot(h, wmug, preferred_element_type=jnp.float32) + bmug
        mu = mg[:, 0:d2]
        gamma = mg[:, d2:2 * d2]

        # ---- reparameterize (training=True): z = (randn*0.01)*exp(0.5*gamma)+mu
        std = jnp.exp(0.5 * gamma)
        z = (eps * 0.01) * std + mu

        # ---- decoder: Linear + ReLU + Linear (sigmoid handled via logits) ----
        hd = jnp.dot(z, wd1, preferred_element_type=jnp.float32) + bd1
        hd = jnp.maximum(hd, 0.0)
        logits = jnp.dot(hd, wd2, preferred_element_type=jnp.float32) + bd2

        # ---- sigmoid + BCE (reduction='sum') computed from logits ----
        #   log(sigmoid(l))     = -log(1 + exp(-l))
        #   log(1 - sigmoid(l)) = -l - log(1 + exp(-l))
        # PyTorch BCELoss clamps both logs at -100 (dead at these magnitudes,
        # kept for fidelity).
        e = jnp.exp(-logits)
        sp = jnp.log(1.0 + e)
        log_o = jnp.maximum(-sp, -100.0)
        log_1mo = jnp.maximum(-logits - sp, -100.0)
        bce = -jnp.sum(x * (log_o - log_1mo) + log_1mo)
        out = pl.reciprocal(1.0 + e, approx=True)         # sigmoid(logits)

        # ---- KLD = -0.5*sum(1 + gamma - mu^2 - exp(gamma)); exp(gamma)=std*std
        kld = -0.5 * jnp.sum(1.0 + gamma - mu * mu - std * std)

        scalars_ref[0] = bce + 0.0005 * kld               # loss
        scalars_ref[1] = bce                              # BCE
        scalars_ref[2] = kld * (1.0 / batch)              # KLD / batch
        xout_ref[...] = out.astype(xout_ref.dtype)

    return kernel


def pack_params(params, shapes):
    """Pack the 10 Linear weights/biases into one (rows, 128) f32 slab.

    Weights are stored (in, out) so the kernel computes y = x @ W + b
    (equivalent to PyTorch's x @ W_pt.T + b).  The mu and gamma heads are
    fused side by side so they share a single matmul.  Done once per set of
    parameters (outside the hot path).
    """
    d0, d1, d2 = shapes
    we, be, wmu, bmu, wg, bg, wd1, bd1, wd2, bd2 = params
    wmug = jnp.concatenate([wmu, wg], axis=1)                         # (d1, 2*d2)
    bmug = jnp.concatenate([bmu.reshape(1, -1), bg.reshape(1, -1)], axis=1)

    rows = d0 + d1 + d2 + d1 + 4                                      # weights + 4 bias rows
    rows_pad = -(-rows // 8) * 8                                      # sublane multiple of 8
    slab = jnp.zeros((rows_pad, _LANES), jnp.float32)

    def put(s, r, m):
        m = m.reshape((-1, m.shape[-1])).astype(jnp.float32)
        return s.at[r:r + m.shape[0], 0:m.shape[1]].set(m)

    r = 0
    slab = put(slab, r, we)
    r += d0
    slab = put(slab, r, wmug)
    r += d1
    slab = put(slab, r, wd1)
    r += d2
    slab = put(slab, r, wd2)
    r += d1
    slab = put(slab, r + 0, be)
    slab = put(slab, r + 1, bmug)
    slab = put(slab, r + 2, bd1)
    slab = put(slab, r + 3, bd2)
    return slab


def vae3_forward(x, eps, param_slab, shapes):
    """Full VAE3.forward(inputs, training=True). Returns (loss, BCE, KLD/B, recon)."""
    d0, d1, d2 = shapes
    B = x.shape[0]
    vmem = pl.BlockSpec(memory_space=pltpu.MemorySpace.VMEM)
    smem = pl.BlockSpec(memory_space=pltpu.MemorySpace.SMEM)
    scalars, recon = pl.pallas_call(
        _make_vae3_kernel(d0, d1, d2, float(B)),
        out_shape=(
            jax.ShapeDtypeStruct((3,), jnp.float32),      # [loss, BCE, KLD/B]
            jax.ShapeDtypeStruct((B, d0), jnp.float32),   # reconstruction (already (B, -1))
        ),
        in_specs=[vmem, vmem, vmem],
        out_specs=(smem, vmem),
    )(x, eps, param_slab)
    return scalars[0], scalars[1], scalars[2], recon


def _make_linear_params(key, d_in, d_out):
    """Deterministic synthetic Linear params (PyTorch-style U(-1/sqrt(in), 1/sqrt(in)))."""
    kw, kb = jax.random.split(key)
    bound = 1.0 / jnp.sqrt(jnp.float32(d_in))
    w = jax.random.uniform(kw, (d_in, d_out), jnp.float32, -bound, bound)
    b = jax.random.uniform(kb, (1, d_out), jnp.float32, -bound, bound)
    return w, b


def _reference_forward(x, eps, params):
    """Pure-JAX reference of the PyTorch module's math (unpacked params)."""
    we, be, wmu, bmu, wg, bg, wd1, bd1, wd2, bd2 = params
    h = jnp.maximum(x @ we + be, 0.0)
    mu = h @ wmu + bmu
    gamma = h @ wg + bg
    z = (eps * 0.01) * jnp.exp(0.5 * gamma) + mu
    hd = jnp.maximum(z @ wd1 + bd1, 0.0)
    out = jax.nn.sigmoid(hd @ wd2 + bd2)
    log_o = jnp.maximum(jnp.log(out), -100.0)
    log_1mo = jnp.maximum(jnp.log(1.0 - out), -100.0)
    bce = -jnp.sum(x * log_o + (1.0 - x) * log_1mo)
    kld = -0.5 * jnp.sum(1.0 + gamma - mu * mu - jnp.exp(gamma))
    return bce + 0.0005 * kld, bce, kld / x.shape[0], out


if __name__ == "__main__":
    # shapes = (input_dim, hidden_dim, latent_dim)
    shapes = (64, 32, 16)
    B = 8

    root = jax.random.PRNGKey(0)
    k_x, k_eps, k_enc, k_mu, k_g, k_d1, k_d2 = jax.random.split(root, 7)

    # Inputs must lie in (0, 1) — they are BCE targets.
    x = jax.random.uniform(k_x, (B, shapes[0]), jnp.float32, 0.01, 0.99)
    # Noise for reparameterization (torch.randn_like equivalent), generated
    # here deterministically and fed to the kernel.
    eps = jax.random.normal(k_eps, (B, shapes[2]), jnp.float32)

    we, be = _make_linear_params(k_enc, shapes[0], shapes[1])      # encoder Linear
    wmu, bmu = _make_linear_params(k_mu, shapes[1], shapes[2])     # mu head
    wg, bg = _make_linear_params(k_g, shapes[1], shapes[2])        # gamma head
    wd1, bd1 = _make_linear_params(k_d1, shapes[2], shapes[1])     # decoder Linear 1
    wd2, bd2 = _make_linear_params(k_d2, shapes[1], shapes[0])     # decoder Linear 2
    params = (we, be, wmu, bmu, wg, bg, wd1, bd1, wd2, bd2)

    param_slab = pack_params(params, shapes)                       # one-time packing

    loss, bce, kld_per_b, recon = vae3_forward(x, eps, param_slab, shapes)
    jax.block_until_ready((loss, bce, kld_per_b, recon))

    # Sanity-check against a pure-JAX reference of the same math.
    r_loss, r_bce, r_kld, r_recon = _reference_forward(x, eps, params)
    assert jnp.allclose(loss, r_loss, rtol=1e-3, atol=1e-2)
    assert jnp.allclose(bce, r_bce, rtol=1e-3, atol=1e-2)
    assert jnp.allclose(kld_per_b, r_kld, rtol=1e-3, atol=1e-2)
    # recon uses the EUP approximate reciprocal for sigmoid -> slightly looser.
    assert jnp.allclose(recon, r_recon, rtol=5e-3, atol=5e-3)

    print("KERNEL_OK")
</pallas_src>

<mosaic_0001>
module attributes {stable_mosaic.version = 11 : i64} {
  func.func @kernel(%arg0: memref<8x64xf32, #tpu.memory_space<vmem>>, %arg1: memref<8x16xf32, #tpu.memory_space<vmem>>, %arg2: memref<152x128xf32, #tpu.memory_space<vmem>>, %arg3: memref<3xf32, #tpu.memory_space<smem>>, %arg4: memref<8x64xf32, #tpu.memory_space<vmem>>) attributes {dimension_semantics = [], scalar_prefetch = 0 : i64, scratch_operands = 0 : i64, tpu.core_type = #tpu.core_type<tc>} {
    %c0 = arith.constant 0 : index
    %c0_0 = arith.constant 0 : index
    %0 = vector.load %arg0[%c0, %c0_0] : memref<8x64xf32, #tpu.memory_space<vmem>>, vector<8x64xf32>
    %c0_1 = arith.constant 0 : index
    %c0_2 = arith.constant 0 : index
    %1 = vector.load %arg1[%c0_1, %c0_2] : memref<8x16xf32, #tpu.memory_space<vmem>>, vector<8x16xf32>
    %c0_3 = arith.constant 0 : index
    %c0_4 = arith.constant 0 : index
    %2 = vector.load %arg2[%c0_3, %c0_4] : memref<152x128xf32, #tpu.memory_space<vmem>>, vector<64x32xf32>
    %c64 = arith.constant 64 : index
    %c0_5 = arith.constant 0 : index
    %3 = vector.load %arg2[%c64, %c0_5] : memref<152x128xf32, #tpu.memory_space<vmem>>, vector<32x32xf32>
    %c96 = arith.constant 96 : index
    %c0_6 = arith.constant 0 : index
    %4 = vector.load %arg2[%c96, %c0_6] : memref<152x128xf32, #tpu.memory_space<vmem>>, vector<16x32xf32>
    %c112 = arith.constant 112 : index
    %c0_7 = arith.constant 0 : index
    %5 = vector.load %arg2[%c112, %c0_7] : memref<152x128xf32, #tpu.memory_space<vmem>>, vector<32x64xf32>
    %c144 = arith.constant 144 : index
    %c0_8 = arith.constant 0 : index
    %6 = vector.load %arg2[%c144, %c0_8] : memref<152x128xf32, #tpu.memory_space<vmem>>, vector<1x32xf32>
    %c145 = arith.constant 145 : index
    %c0_9 = arith.constant 0 : index
    %7 = vector.load %arg2[%c145, %c0_9] : memref<152x128xf32, #tpu.memory_space<vmem>>, vector<1x32xf32>
    %c146 = arith.constant 146 : index
    %c0_10 = arith.constant 0 : index
    %8 = vector.load %arg2[%c146, %c0_10] : memref<152x128xf32, #tpu.memory_space<vmem>>, vector<1x32xf32>
    %c147 = arith.constant 147 : index
    %c0_11 = arith.constant 0 : index
    %9 = vector.load %arg2[%c147, %c0_11] : memref<152x128xf32, #tpu.memory_space<vmem>>, vector<1x64xf32>
    %cst = arith.constant dense<0.000000e+00> : vector<8x32xf32>
    %10 = tpu.matmul %0, %2, %cst {dimension_numbers = #tpu.dot_dimension_numbers<[1], [0], [0], [1], [0, 0, 1, 1], [], []>} : vector<8x64xf32>, vector<64x32xf32>, vector<8x32xf32> -> vector<8x32xf32>
    %11 = vector.broadcast %6 : vector<1x32xf32> to vector<8x32xf32>
    %12 = arith.addf %10, %11 : vector<8x32xf32>
    %cst_12 = arith.constant 0.000000e+00 : f32
    %13 = vector.broadcast %cst_12 : f32 to vector<8x32xf32>
    %14 = arith.maximumf %12, %13 : vector<8x32xf32>
    %cst_13 = arith.constant dense<0.000000e+00> : vector<8x32xf32>
    %15 = tpu.matmul %14, %3, %cst_13 {dimension_numbers = #tpu.dot_dimension_numbers<[1], [0], [0], [1], [0, 0, 1, 1], [], []>} : vector<8x32xf32>, vector<32x32xf32>, vector<8x32xf32> -> vector<8x32xf32>
    %16 = vector.broadcast %7 : vector<1x32xf32> to vector<8x32xf32>
    %17 = arith.addf %15, %16 : vector<8x32xf32>
    %18 = vector.extract_strided_slice %17 {offsets = [0, 0], sizes = [8, 16], strides = [1, 1]} : vector<8x32xf32> to vector<8x16xf32>
    %19 = vector.extract_strided_slice %17 {offsets = [0, 16], sizes = [8, 16], strides = [1, 1]} : vector<8x32xf32> to vector<8x16xf32>
    %cst_14 = arith.constant 5.000000e-01 : f32
    %20 = vector.broadcast %cst_14 : f32 to vector<8x16xf32>
    %21 = arith.mulf %20, %19 : vector<8x16xf32>
    %22 = math.exp %21 : vector<8x16xf32>
    %cst_15 = arith.constant 0.00999999977 : f32
    %23 = vector.broadcast %cst_15 : f32 to vector<8x16xf32>
    %24 = arith.mulf %1, %23 : vector<8x16xf32>
    %25 = arith.mulf %24, %22 : vector<8x16xf32>
    %26 = arith.addf %25, %18 : vector<8x16xf32>
    %cst_16 = arith.constant dense<0.000000e+00> : vector<8x32xf32>
    %27 = tpu.matmul %26, %4, %cst_16 {dimension_numbers = #tpu.dot_dimension_numbers<[1], [0], [0], [1], [0, 0, 1, 1], [], []>} : vector<8x16xf32>, vector<16x32xf32>, vector<8x32xf32> -> vector<8x32xf32>
    %28 = vector.broadcast %8 : vector<1x32xf32> to vector<8x32xf32>
    %29 = arith.addf %27, %28 : vector<8x32xf32>
    %cst_17 = arith.constant 0.000000e+00 : f32
    %30 = vector.broadcast %cst_17 : f32 to vector<8x32xf32>
    %31 = arith.maximumf %29, %30 : vector<8x32xf32>
    %cst_18 = arith.constant dense<0.000000e+00> : vector<8x64xf32>
    %32 = tpu.matmul %31, %5, %cst_18 {dimension_numbers = #tpu.dot_dimension_numbers<[1], [0], [0], [1], [0, 0, 1, 1], [], []>} : vector<8x32xf32>, vector<32x64xf32>, vector<8x64xf32> -> vector<8x64xf32>
    %33 = vector.broadcast %9 : vector<1x64xf32> to vector<8x64xf32>
    %34 = arith.addf %32, %33 : vector<8x64xf32>
    %cst_19 = arith.constant 0.000000e+00 : f32
    %35 = vector.broadcast %cst_19 : f32 to vector<8x64xf32>
    %36 = arith.subf %35, %34 : vector<8x64xf32>
    %37 = math.exp %36 : vector<8x64xf32>
    %cst_20 = arith.constant 1.000000e+00 : f32
    %38 = vector.broadcast %cst_20 : f32 to vector<8x64xf32>
    %39 = arith.addf %38, %37 : vector<8x64xf32>
    %40 = math.log %39 : vector<8x64xf32>
    %cst_21 = arith.constant 0.000000e+00 : f32
    %41 = vector.broadcast %cst_21 : f32 to vector<8x64xf32>
    %42 = arith.subf %41, %40 : vector<8x64xf32>
    %cst_22 = arith.constant -1.000000e+02 : f32
    %43 = vector.broadcast %cst_22 : f32 to vector<8x64xf32>
    %44 = arith.maximumf %42, %43 : vector<8x64xf32>
    %cst_23 = arith.constant 0.000000e+00 : f32
    %45 = vector.broadcast %cst_23 : f32 to vector<8x64xf32>
    %46 = arith.subf %45, %34 : vector<8x64xf32>
    %47 = arith.subf %46, %40 : vector<8x64xf32>
    %cst_24 = arith.constant -1.000000e+02 : f32
    %48 = vector.broadcast %cst_24 : f32 to vector<8x64xf32>
    %49 = arith.maximumf %47, %48 : vector<8x64xf32>
    %50 = arith.subf %44, %49 : vector<8x64xf32>
    %51 = arith.mulf %0, %50 : vector<8x64xf32>
    %52 = arith.addf %51, %49 : vector<8x64xf32>
    %53 = vector.shape_cast %52 : vector<8x64xf32> to vector<1x8x64xf32>
    %cst_25 = arith.constant dense<0.000000e+00> : vector<1xf32>
    %54 = vector.multi_reduction <add>, %53, %cst_25 [1, 2] : vector<1x8x64xf32> to vector<1xf32>
    %55 = vector.shape_cast %54 : vector<1xf32> to vector<1x1x1xf32>
    %56 = vector.extract %55[0, 0, 0] : f32 from vector<1x1x1xf32>
    %cst_26 = arith.constant 0.000000e+00 : f32
    %57 = arith.subf %cst_26, %56 : f32
    %cst_27 = arith.constant 1.000000e+00 : f32
    %58 = vector.broadcast %cst_27 : f32 to vector<8x64xf32>
    %59 = arith.addf %58, %37 : vector<8x64xf32>
    %60 = tpu.reciprocal %59 {approx = true} : vector<8x64xf32> -> vector<8x64xf32>
    %cst_28 = arith.constant 1.000000e+00 : f32
    %61 = vector.broadcast %cst_28 : f32 to vector<8x16xf32>
    %62 = arith.addf %61, %19 : vector<8x16xf32>
    %63 = arith.mulf %18, %18 : vector<8x16xf32>
    %64 = arith.subf %62, %63 : vector<8x16xf32>
    %65 = arith.mulf %22, %22 : vector<8x16xf32>
    %66 = arith.subf %64, %65 : vector<8x16xf32>
    %67 = vector.shape_cast %66 : vector<8x16xf32> to vector<1x8x16xf32>
    %cst_29 = arith.constant dense<0.000000e+00> : vector<1xf32>
    %68 = vector.multi_reduction <add>, %67, %cst_29 [1, 2] : vector<1x8x16xf32> to vector<1xf32>
    %69 = vector.shape_cast %68 : vector<1xf32> to vector<1x1x1xf32>
    %70 = vector.extract %69[0, 0, 0] : f32 from vector<1x1x1xf32>
    %cst_30 = arith.constant -5.000000e-01 : f32
    %71 = arith.mulf %cst_30, %70 : f32
    %cst_31 = arith.constant 5.000000e-04 : f32
    %72 = arith.mulf %cst_31, %71 : f32
    %73 = arith.addf %57, %72 : f32
    %c0_32 = arith.constant 0 : index
    %74 = memref.load %arg3[%c0_32] : memref<3xf32, #tpu.memory_space<smem>>
    memref.store %73, %arg3[%c0_32] : memref<3xf32, #tpu.memory_space<smem>>
    %c1 = arith.constant 1 : index
    %75 = memref.load %arg3[%c1] : memref<3xf32, #tpu.memory_space<smem>>
    memref.store %57, %arg3[%c1] : memref<3xf32, #tpu.memory_space<smem>>
    %cst_33 = arith.constant 1.250000e-01 : f32
    %76 = arith.mulf %71, %cst_33 : f32
    %c2 = arith.constant 2 : index
    %77 = memref.load %arg3[%c2] : memref<3xf32, #tpu.memory_space<smem>>
    memref.store %76, %arg3[%c2] : memref<3xf32, #tpu.memory_space<smem>>
    %c0_34 = arith.constant 0 : index
    %c0_35 = arith.constant 0 : index
    %78 = vector.load %arg4[%c0_34, %c0_35] : memref<8x64xf32, #tpu.memory_space<vmem>>, vector<8x64xf32>
    tpu.vector_store %arg4[%c0_34, %c0_35], %60 {strides = array<i32>} : memref<8x64xf32, #tpu.memory_space<vmem>>, vector<8x64xf32>,
    return
  }
}

</mosaic_0001>

<bundles_post_ra>
// kernel: tpu_custom_call.1
= control target key start
LH: loop header
LB: loop body
LE: loop exit
PB: predicated region body
PF: predicated region fallthrough
CT: control target
= control target key end

     0   :  { %10 = vsyncpa [#allocation3], 0  ;;  %s850_s0 = inlined_call_operand.hbm [shape: f32[8,64], index: 0, kind: input, shape index: {}]   ;;  %s851_s1 = inlined_call_operand.hbm [shape: f32[8,16], index: 1, kind: input, shape index: {}]   ;;  %s852_s2 = inlined_call_operand.hbm [shape: f32[152,128], index: 2, kind: input, shape index: {}]   ;;  %s853_s3 = inlined_call_operand.hbm [shape: f32[3], index: 3, kind: output, shape index: {0}]   ;;  %s854_s4 = inlined_call_operand.hbm [shape: f32[8,64], index: 4, kind: output, shape index: {1}]  }
   0x1   :  { %11 = vsyncpa [#allocation7], 0 }
   0x2   :  { %12 = vsyncpa [#allocation5], 0 }
   0x3   :  { %13 = vsyncpa [#allocation4], 0  ;;  %s725_s15 = smov [#allocation6]   ;;  %s726_s17 = smov [#allocation2]  }
   0x4   :  { %s30_s16 = sshll.u32 %s725_s15, 4  ;;  %s20_s18 = sshll.u32 %s726_s17, 4  ;;  %s31_s16 = int_to_ptr.vmem [resolvable:$true] %s30_s16  ;;  %s21_s18 = int_to_ptr.vmem [resolvable:$true] %s20_s18 }
   0x5   :  { %s619_s21 = scalar_lea.hbm %s851_s1, 128 }
   0x6   :  { %p620_p0 = scmp.ne.s32.totalorder %s851_s1, %s619_s21  ;;  %p623_p1 = scmp.lt.u32.totalorder %s619_s21, %s851_s1 }
   0x8   :  { %p625_p2 = pnand %p623_p1, %p620_p0 }
   0xa   :  { %628 = shalt.err (!%p625_p2)
}
   0xb   :  { %s629_s26 = scalar_lea.vmem %s31_s16, 128  ;;  %p634_p4 = scmp.lt.s32.totalorder %s31_s16, %s31_s16 }
   0xc   :  { %p630_p3 = scmp.ne.s32.totalorder %s31_s16, %s629_s26  ;;  %p635_p5 = scmp.lt.s32.totalorder %s629_s26, %s629_s26 }
   0xe   :  { %p636_p6 = por %p635_p5, %p634_p4 }
  0x10   :  { %p637_p7 = pnand %p636_p6, %p630_p3 }
  0x12   :  { %640 = shalt.err (!%p637_p7)
}
  0x13   :  { %33 = dma.hbm_to_vmem [thread:$0]  %s851_s1, 128, %s31_s16, [#allocation7]  }
  0x14   :  { %s641_s5 = scalar_lea.hbm %s850_s0, 128 }
  0x15   :  { %p642_p8 = scmp.ne.s32.totalorder %s850_s0, %s641_s5  ;;  %p645_p9 = scmp.lt.u32.totalorder %s641_s5, %s850_s0 }
  0x17   :  { %p647_p10 = pnand %p645_p9, %p642_p8 }
  0x19   :  { %650 = shalt.err (!%p647_p10)
}
  0x1a   :  { %s651_s10 = scalar_lea.vmem %s21_s18, 128  ;;  %p656_p12 = scmp.lt.s32.totalorder %s21_s18, %s21_s18 }
  0x1b   :  { %p652_p11 = scmp.ne.s32.totalorder %s21_s18, %s651_s10  ;;  %p657_p13 = scmp.lt.s32.totalorder %s651_s10, %s651_s10 }
  0x1d   :  { %p658_p0 = por %p657_p13, %p656_p12 }
  0x1f   :  { %p659_p1 = pnand %p658_p0, %p652_p11 }
  0x21   :  { %662 = shalt.err (!%p659_p1)
}
  0x22   :  { %23 = dma.hbm_to_vmem [thread:$0]  %s850_s0, 128, %s21_s18, [#allocation3]  }
  0x23   :  { %s727_s12 = smov [#allocation8]   ;;  %s663_s16 = scalar_lea.hbm %s852_s2, 2432 }
  0x24   :  { %s39_s13 = sshll.u32 %s727_s12, 4  ;;  %p664_p2 = scmp.ne.s32.totalorder %s852_s2, %s663_s16  ;;  %s40_s13 = int_to_ptr.vmem [resolvable:$true] %s39_s13 }
  0x25   :  { %p667_p3 = scmp.lt.u32.totalorder %s663_s16, %s852_s2 }
  0x27   :  { %p669_p4 = pnand %p667_p3, %p664_p2 }
  0x29   :  { %672 = shalt.err (!%p669_p4)
}
  0x2a   :  { %s673_s22 = scalar_lea.vmem %s40_s13, 2432  ;;  %p678_p6 = scmp.lt.s32.totalorder %s40_s13, %s40_s13 }
  0x2b   :  { %p674_p5 = scmp.ne.s32.totalorder %s40_s13, %s673_s22  ;;  %p679_p7 = scmp.lt.s32.totalorder %s673_s22, %s673_s22 }
  0x2d   :  { %p680_p8 = por %p679_p7, %p678_p6 }
  0x2f   :  { %p681_p9 = pnand %p680_p8, %p674_p5 }
  0x31   :  { %684 = shalt.err (!%p681_p9)
}
  0x32   :  { %s728_s0 = smov 128   ;;  %s729_s18 = smov 8  }
  0x33   :  { %45 = dma.hbm_to_vmem [thread:$0]  %s852_s2, 2432, %s40_s13, [#allocation7], %s728_s0, %s728_s0, %s729_s18  }
  0x34   :  { %717 = dma.done.wait [#allocation3], 128  }
  0x35   :  { %718 = vsyncadd [#allocation3], 4294967168 }
  0x36   :  { %719 = dma.done.wait [#allocation7], 2560  }
  0x37   :  { %720 = vsyncadd [#allocation7], 4294964736  ;;  %v730_v0 = vmov 0.0|0.0   ;;  %vm731_vm0 = vmmov 0   ;;  %v732_v1 = vmov 0.0   ;;  %v57_v2 = vld [vmem:[#allocation8] sm:$0xff] }
  0x38   :  { %568 = vmatprep.subr.bf16.mxu0 %v730_v0  ;;  %536 = vmatprep.mubr.msk.f32.mxu0 %vm731_vm0, %v732_v1  ;;  %v58_v3 = vld [vmem:[#allocation8 + $0x8] sm:$0xff]  ;;  %v59_v4 = vld [vmem:[#allocation8 + $0x10] sm:$0xff]  ;;  %v60_v6 = vld [vmem:[#allocation8 + $0x18] sm:$0xff]  ;;  %vm83_vm1 = vcmask 523264   ;;  %vm162_vm2 = vcmask 261120   ;;  %s733_s2 = smov 112  }
  0x39   :  { %580 = vmatprep.subr.bf16.mxu1 %v730_v0  ;;  %547 = vmatprep.mubr.msk.f32.mxu1 %vm731_vm0, %v732_v1  ;;  %v569_v5 = vpack.c.bf16 %v58_v3, %v57_v2  ;;  %v572_v7 = vpack.c.bf16 %v60_v6, %v59_v4  ;;  %v65_v8 = vld [vmem:[#allocation8 + $0x40] sm:$0xff]  ;;  %v66_v9 = vld [vmem:[#allocation8 + $0x48] sm:$0xff]  ;;  %v63_v14 = vld [vmem:[#allocation8 + $0x30] sm:$0xff]  ;;  %s734_s25 = smov 16   ;;  %vm250_vm3 = vcmask 130048   ;;  %s735_s26 = smov [#allocation10]  }
  0x3a   :  { %v61_v10 = vld [vmem:[#allocation8 + $0x20] sm:$0xff]  ;;  %v62_v11 = vld [vmem:[#allocation8 + $0x28] sm:$0xff]  ;;  %v581_v12 = vpack.c.bf16 %v66_v9, %v65_v8  ;;  %v64_v15 = vld [vmem:[#allocation8 + $0x38] sm:$0xff]  ;;  %s475_s27 = sshll.u32 %s735_s26, 4  ;;  %s476_s27 = int_to_ptr.vmem [resolvable:$true] %s475_s27 }
  0x3b   :  { %570 = vmatpush3.bf16.msra.mxu0 %v569_v5  ;;  %v575_v13 = vpack.c.bf16 %v62_v11, %v61_v10  ;;  %v578_v16 = vpack.c.bf16 %v64_v15, %v63_v14  ;;  %v808_v17 = vld [vmem:[#allocation2] sm:$0xff]  ;;  %v68_v19 = vld [vmem:[#allocation8 + $0x58] sm:$0xff]  ;;  %v69_v31 = vld [vmem:[#allocation8 + $0x60] sm:$0xff]  ;;  %s685_s28 = scalar_lea.vmem %s476_s27, 128  ;;  %p690_p11 = scmp.lt.s32.totalorder %s476_s27, %s476_s27 }
  0x3c   :  { %571 = vmatprep.subr.bf16.mxu0 %v730_v0  ;;  %582 = vmatpush3.bf16.msra.mxu1 %v581_v12  ;;  %v67_v18 = vld [vmem:[#allocation8 + $0x50] sm:$0xff]  ;;  %v70_v32 = vld [vmem:[#allocation8 + $0x68] sm:$0xff]  ;;  %v56_v37 = vld [vmem:[#allocation6] sm:$0xff]  ;;  %p686_p10 = scmp.ne.s32.totalorder %s476_s27, %s685_s28  ;;  %p691_p12 = scmp.lt.s32.totalorder %s685_s28, %s685_s28 }
  0x3d   :  { %583 = vmatprep.subr.bf16.mxu1 %v730_v0  ;;  %v584_v20 = vpack.c.bf16 %v68_v19, %v67_v18  ;;  %v490_v21 = vld [vmem:[#allocation8 + $0x90] ss:$0 sm:$0xff]  ;;  %v492_v26 = vld [vmem:[#allocation8 + $0x91] ss:$0 sm:$0xff]  ;;  %v587_v33 = vpack.c.bf16 %v70_v32, %v69_v31  ;;  %v239_v38 = vmul.f32 0.01, %v56_v37 }
  0x3e   :  { %v71_v39 = vld [vmem:[#allocation8 + $0x70] sm:$0xff]  ;;  %v72_v40 = vld [vmem:[#allocation8 + $0x78] sm:$0xff]  ;;  %v73_v50 = vld [vmem:[#allocation8 + $0x80] sm:$0xff]  ;;  %p692_p13 = por %p691_p12, %p690_p11 }
  0x3f   :  { %573 = vmatpush3.bf16.msra.mxu0 %v572_v7  ;;  %v590_v43 = vpack.c.bf16 %v72_v40, %v71_v39  ;;  %v74_v51 = vld [vmem:[#allocation8 + $0x88] sm:$0xff]  ;;  %v494_v55 = vld [vmem:[#allocation8 + $0x92] ss:$0 sm:$0xff]  ;;  %v496_v60 = vld [vmem:[#allocation8 + $0x93] ss:$0 sm:$0xff] }
  0x40   :  { %574 = vmatprep.subr.bf16.mxu0 %v730_v0  ;;  %585 = vmatpush3.bf16.msra.mxu1 %v584_v20  ;;  %v593_v52 = vpack.c.bf16 %v74_v51, %v73_v50  ;;  %p693_p0 = pnand %p692_p13, %p686_p10 }
  0x41   :  { %586 = vmatprep.subr.bf16.mxu1 %v730_v0 }
  0x43   :  { %576 = vmatpush3.bf16.msra.mxu0 %v575_v13 }
  0x44   :  { %577 = vmatprep.subr.bf16.mxu0 %v730_v0 }
  0x47   :  { %579 = vmatpush3.bf16.msra.mxu0 %v578_v16 }
  0x4a   :  { %537 = vmatmul.mubr.msk.f32.vlgmr.msra.gmra.mrb[0].mxu0 %vm83_vm1, %v808_v17 }
 0x11d   :  { %v153_v22 = vpop.f32.mrb[0].mxu0 }
 0x11e   :  { %v154_v23 = vadd.f32 %v490_v21, %v153_v22  ;;  %v538_v24 = vpop.f32.mrb[1].mxu0 }
 0x120   :  { %v157_v25 = vmax.f32 %v154_v23, 0.0 }
 0x122   :  { %548 = vmatmul.mubr.msk.f32.vlgmr.msra.gmra.mrb[0].mxu1 %vm162_vm2, %v157_v25 }
 0x123   :  { %554 = vmatprep.mubr.msk.f32.mxu1 %vm731_vm0, %v732_v1  ;;  %588 = vmatpush3.bf16.msra.mxu1 %v587_v33 }
 0x124   :  { %589 = vmatprep.subr.bf16.mxu1 %v730_v0 }
 0x1f5   :  { %v232_v27 = vpop.f32.mrb[0].mxu1 }
 0x1f6   :  { %v233_v28 = vadd.f32 %v492_v26, %v232_v27  ;;  %v549_v29 = vpop.f32.mrb[1].mxu1 }
 0x1f8   :  { %v236_v30 = vmul.f32 0.5, %v233_v28  ;;  %v428_v36 = vmul.f32 %v233_v28, %v233_v28  ;;  %v427_v45 = vadd.f32 1.0, %v233_v28 }
 0x1fa   :  { %v237_v34 = vmul.f32 1.442695, %v236_v30 }
 0x1fc   :  { %611 = vpow2.f32 %v237_v34 }
 0x206   :  { %v612_v35 = vpop.eup %611 }
 0x207   :  { %241 = vrot.lane.b32.xlu0 %v612_v35, %s733_s2  ;;  %v434_v48 = vmul.f32 %v612_v35, %v612_v35 }
 0x20b   :  { %430 = vrot.lane.b32.xlu0 %v428_v36, %s734_s25 }
 0x279   :  { %v242_v41 = vpop.permute.xlu0 %241 }
 0x27a   :  { %v244_v42 = vmul.f32 %v242_v41, %v239_v38 }
 0x27c   :  { %v245_v44 = vadd.f32 %v244_v42, %v233_v28 }
 0x27d   :  { %v431_v46 = vpop.permute.xlu0 %430 }
 0x27e   :  { %v433_v47 = vsub.f32 %v427_v45, %v431_v46  ;;  %555 = vmatmul.mubr.msk.f32.vlgmr.msra.gmra.mrb[2].mxu1 %vm250_vm3, %v245_v44 }
 0x27f   :  { %591 = vmatpush3.bf16.msra.mxu1 %v590_v43  ;;  %565 = vmatprep.mubr.msk.f32.mxu1 %vm731_vm0, %v732_v1 }
 0x280   :  { %v435_v49 = vsub.f32 %v433_v47, %v434_v48  ;;  %592 = vmatprep.subr.bf16.mxu1 %v730_v0 }
 0x282   :  { %437 = vrot.lane.b32.xlu1 %v435_v49, %s733_s2 }
 0x283   :  { %594 = vmatpush3.bf16.msra.mxu1 %v593_v52 }
 0x2f4   :  { %v438_v53 = vpop.permute.xlu1 %437 }
 0x2f5   :  { %v440_v54 = vsel %vm250_vm3, %v438_v53, 0.0 }
 0x2f6   :  { %441 = vadd.xlane.f32.xlu0 %v440_v54 }
 0x351   :  { %v320_v56 = vpop.f32.mrb[2].mxu1 }
 0x352   :  { %v321_v57 = vadd.f32 %v494_v55, %v320_v56  ;;  %v556_v58 = vpop.f32.mrb[3].mxu1 }
 0x354   :  { %v324_v59 = vmax.f32 %v321_v57, 0.0 }
 0x356   :  { %566 = vmatmul.mubr.msk.f32.vlgmr.msra.gmra.mrb[4].mxu1 %vm162_vm2, %v324_v59 }
 0x429   :  { %v398_v61 = vpop.f32.mrb[4].mxu1 }
 0x42a   :  { %v399_v62 = vadd.f32 %v496_v60, %v398_v61  ;;  %v567_v63 = vpop.f32.mrb[5].mxu1 }
 0x42c   :  { %v402_v0 = vsub.f32 0.0, %v399_v62 }
 0x42e   :  { %v403_v1 = vmul.f32 1.442695, %v402_v0 }
 0x430   :  { %613 = vpow2.f32 %v403_v1 }
 0x43a   :  { %v614_v2 = vpop.eup %613 }
 0x43b   :  { %v405_v3 = vadd.f32 1.0, %v614_v2 }
 0x43d   :  { %615 = vlog2.f32 %v405_v3 }
 0x43e   :  { %617 = vrcp.f32 %v405_v3 }
 0x447   :  { %v616_v4 = vpop.eup %615 }
 0x448   :  { %v618_v5 = vpop.eup %617  ;;  %v407_v6 = vmul.f32 0.6931472, %v616_v4 }
 0x449   :  { %460 = vst.msk [vmem:[#allocation10] sm:$0xff] %vm83_vm1, %v618_v5 }
 0x44a   :  { %v408_v7 = vsub.f32 0.0, %v407_v6  ;;  %v410_v8 = vsub.f32 %v402_v0, %v407_v6 }
 0x44c   :  { %v409_v9 = vmax.f32 %v408_v7, -100.0  ;;  %v411_v10 = vmax.f32 %v410_v8, -100.0 }
 0x44e   :  { %v412_v11 = vsub.f32 %v409_v9, %v411_v10 }
 0x450   :  { %v413_v12 = vmul.f32 %v412_v11, %v808_v17 }
 0x452   :  { %v414_v13 = vadd.f32 %v413_v12, %v411_v10 }
 0x454   :  { %v415_v14 = vsel %vm83_vm1, %v414_v13, 0.0 }
 0x455   :  { %416 = vadd.xlane.f32.xlu1 %v415_v14 }
 0x456   :  { %696 = shalt.err (!%p693_p0)
}
 0x457   :  { %s697_s5 = scalar_lea.hbm %s854_s4, 128 }
 0x458   :  { %p698_p1 = scmp.ne.s32.totalorder %s854_s4, %s697_s5  ;;  %p701_p2 = scmp.lt.u32.totalorder %s697_s5, %s854_s4 }
 0x45a   :  { %p703_p3 = pnand %p701_p2, %p698_p1 }
 0x45c   :  { %706 = shalt.err (!%p703_p3)
}
 0x45d   :  { %478 = dma.vmem_to_hbm [thread:$0]  %s476_s27, 128, %s854_s4, [#allocation4]   ;;  %v442_v15 = vpop.xlane.xlu0 %441 }
 0x45e   :  { %v443_v16 = vrot.slane %v442_v15, 4  ;;  %s707_s20 = scalar_lea.hbm %s853_s3, 16 }
 0x45f   :  { %p708_p4 = scmp.ne.s32.totalorder %s853_s3, %s707_s20  ;;  %p711_p5 = scmp.lt.u32.totalorder %s707_s20, %s853_s3 }
 0x460   :  { %v444_v17 = vadd.f32 %v443_v16, %v442_v15 }
 0x461   :  { %p713_p6 = pnand %p711_p5, %p708_p4 }
 0x462   :  { %v445_v18 = vrot.slane %v444_v17, 2 }
 0x464   :  { %v446_v22 = vadd.f32 %v445_v18, %v444_v17 }
 0x466   :  { %v447_v25 = vrot.slane %v446_v22, 1 }
 0x468   :  { %v448_v28 = vadd.f32 %v447_v25, %v446_v22 }
 0x4e2   :  { %v417_v19 = vpop.xlane.xlu1 %416 }
 0x4e3   :  { %v418_v20 = vrot.slane %v417_v19, 4 }
 0x4e5   :  { %v419_v21 = vadd.f32 %v418_v20, %v417_v19 }
 0x4e7   :  { %v420_v23 = vrot.slane %v419_v21, 2 }
 0x4e9   :  { %v421_v24 = vadd.f32 %v420_v23, %v419_v21 }
 0x4eb   :  { %v422_v26 = vrot.slane %v421_v24, 1 }
 0x4ed   :  { %v423_v27 = vadd.f32 %v422_v26, %v421_v24 }
 0x4ef   :  { %595 = vpush %v423_v27 }
 0x4f0   :  { %597 = vpush %v448_v28 }
 0x520   :  { %s596_s11 = spop %595 }
 0x521   :  { %s425_s12 = ssub.f32 0.0, %s596_s11  ;;  %s598_s13 = spop %597 }
 0x522   :  { %s450_s4 = smul.f32 -0.5, %s598_s13 }
 0x523   :  { %456 = sst [smem:[#allocation9 + $0x1]] %s425_s12 }
 0x524   :  { %s451_s14 = smul.f32 0.0005, %s450_s4 }
 0x525   :  { %s457_s15 = smul.f32 0.125, %s450_s4 }
 0x526   :  { %s452_s16 = sadd.f32 %s451_s14, %s425_s12 }
 0x527   :  { %459 = sst [smem:[#allocation9 + $0x2]] %s457_s15 }
 0x528   :  { %454 = sst [smem:[#allocation9]] %s452_s16 }
 0x529   :  { %716 = shalt.err (!%p713_p6)
}
 0x52a   :  { %s736_s23 = smov [#allocation9]  }
 0x52b   :  { %468 = dma.smem_to_hbm %s736_s23, 16, %s853_s3, [#allocation5]  }
 0x52c   :  { %721 = dma.done.wait [#allocation5], 16  }
 0x52d   :  { %722 = vsyncadd [#allocation5], 4294967280 }
 0x52e   :  { %723 = dma.done.wait [#allocation4], 128  }
 0x52f   :  { %724 = vsyncadd [#allocation4], 4294967168 }
 0x530   :  { %485 = sfence }
 0x531   :  { %486 = vsyncpa [#allocation3], 1 }
 0x532   :  { %487 = vsyncpa [#allocation7], 1 }
 0x533   :  { %488 = vsyncpa [#allocation4], 1 }
 0x534   :  { %489 = vsyncpa [#allocation5], 1 }

</bundles_post_ra>
